<compile_context>
chip_gen: v7x
topology: tpu7x:2x2x1
jax: 0.10.0
libtpu: 0.0.40
codegen_flags: <defaults>
</compile_context>

<pallas_src>
import functools
import math

import jax
import jax.numpy as jnp
from jax.experimental import pallas as pl
from jax.experimental.pallas import tpu as pltpu

_INV_SQRT2 = 1.0 / math.sqrt(2.0)


def _silu(x):
    # Exact SiLU (nn.SiLU semantics).
    return x * jax.nn.sigmoid(x)


def _gelu_exact(x):
    # nn.GELU() default = exact erf formulation.
    return 0.5 * x * (1.0 + jax.lax.erf(x * _INV_SQRT2))


def mlp_kernel(x_ref, w1t_ref, b1_ref, w2t_ref, b2_ref, o_ref):
    # x_ref: (C_in, t_hw) NCHW-contiguous slab; channels on sublanes,
    # spatial positions on lanes (lane-dense, multiple of 128).
    x = x_ref[...]

    # fc1: 1x1 conv == channel matmul (BN scale pre-folded into W1^T) + bias + SiLU
    h = jnp.dot(w1t_ref[...], x, preferred_element_type=jnp.float32)
    h = h + b1_ref[...]
    h = _silu(h)

    # act_layer = nn.GELU(); Dropout(p=0.0) -> identity.
    h = _gelu_exact(h)

    # fc2: 1x1 conv (scale folded) + bias + SiLU; Dropout(p=0.0) -> identity.
    y = jnp.dot(w2t_ref[...], h, preferred_element_type=jnp.float32)
    y = y + b2_ref[...]
    y = _silu(y)

    o_ref[...] = y.astype(o_ref.dtype)


@functools.partial(jax.jit, static_argnames=("t_hw",))
def mlp_forward(x_nchw, w1, s1, b1, w2, s2, b2, *, t_hw=1024):
    """x_nchw: (N, C_in, H, W). w1: (C_in, C_hid), w2: (C_hid, C_out).
    s*/b*: folded BN scale/bias, 1-D of length C_hid / C_out."""
    N, C_in, H, W = x_nchw.shape
    C_hid = w1.shape[1]
    C_out = w2.shape[1]
    HW = H * W

    # Fold BN scale into the conv weights (exact: scale is per output channel),
    # transpose so the kernel computes (C, t_hw) = W^T @ x_blk.
    w1t = (w1 * s1[None, :]).T            # (C_hid, C_in)
    w2t = (w2 * s2[None, :]).T            # (C_out, C_hid)
    b1c = b1[:, None]                     # (C_hid, 1)
    b2c = b2[:, None]                     # (C_out, 1)

    # Spatial tile: lane-dense (multiple of 128), as large as possible up to t_hw.
    tile = min(int(t_hw), pl.cdiv(HW, 128) * 128)
    HW_pad = pl.cdiv(HW, tile) * tile

    x3d = x_nchw.reshape(N, C_in, HW)     # free view, no transpose
    if HW_pad != HW:
        x3d = jnp.pad(x3d, ((0, 0), (0, 0), (0, HW_pad - HW)))

    grid = (N, HW_pad // tile)

    # VMEM budget: double-buffered x/out slabs + resident weights + hidden headroom.
    blk_bytes = 4 * tile * (2 * (C_in + C_out) + 2 * C_hid)
    w_bytes = 4 * (C_in * C_hid + C_hid * C_out + C_hid + C_out)
    vmem_limit = min(64 * 1024 * 1024,
                     max(32 * 1024 * 1024, 4 * (blk_bytes + w_bytes)))

    out3d = pl.pallas_call(
        mlp_kernel,
        out_shape=jax.ShapeDtypeStruct((N, C_out, HW_pad), x_nchw.dtype),
        grid=grid,
        in_specs=[
            pl.BlockSpec((None, C_in, tile), lambda n, j: (n, 0, j)),   # x slab
            pl.BlockSpec((C_hid, C_in), lambda n, j: (0, 0)),           # W1^T (scaled)
            pl.BlockSpec((C_hid, 1), lambda n, j: (0, 0)),              # b1
            pl.BlockSpec((C_out, C_hid), lambda n, j: (0, 0)),          # W2^T (scaled)
            pl.BlockSpec((C_out, 1), lambda n, j: (0, 0)),              # b2
        ],
        out_specs=pl.BlockSpec((None, C_out, tile), lambda n, j: (n, 0, j)),
        compiler_params=pltpu.CompilerParams(
            dimension_semantics=("parallel", "parallel"),
            vmem_limit_bytes=int(vmem_limit)),
    )(x3d, w1t, b1c, w2t, b2c)

    if HW_pad != HW:
        out3d = out3d[:, :, :HW]
    return out3d.reshape(N, C_out, H, W)


def _fold_bn(gamma, beta, running_mean, running_var, eps=1e-5):
    scale = gamma / jnp.sqrt(running_var + eps)
    bias = beta - running_mean * scale
    return scale, bias


def _reference(x_nchw, w1, s1, b1, w2, s2, b2):
    # Pure-JAX reference of the same math (unfused, channels-last).
    x = jnp.transpose(x_nchw, (0, 2, 3, 1)).astype(jnp.float32)
    h = x @ w1 * s1 + b1
    h = _silu(h)
    h = _gelu_exact(h)
    y = h @ w2 * s2 + b2
    y = _silu(y)
    return jnp.transpose(y, (0, 3, 1, 2)).astype(x_nchw.dtype)


if __name__ == "__main__":
    key = jax.random.PRNGKey(0)
    k_x, k_w1, k_w2 = jax.random.split(key, 3)

    # Small shapes consistent with the module.
    N, C_in, H, W = 2, 4, 16, 16
    C_hid, C_out = 8, 4   # hidden_channels=8, out_channels defaults to in_channels

    x = jax.random.normal(k_x, (N, C_in, H, W), dtype=jnp.float32)

    # Conv weights: PyTorch Conv2d (out, in, 1, 1) -> stored as (in, out) for x @ W.
    fan1 = C_in * 1 * 1
    w1 = jax.random.uniform(k_w1, (C_in, C_hid), jnp.float32,
                            -1.0 / math.sqrt(fan1), 1.0 / math.sqrt(fan1))
    fan2 = C_hid * 1 * 1
    w2 = jax.random.uniform(k_w2, (C_hid, C_out), jnp.float32,
                            -1.0 / math.sqrt(fan2), 1.0 / math.sqrt(fan2))

    # BatchNorm2d default init (eval mode): gamma=1, beta=0, mean=0, var=1.
    s1, b1 = _fold_bn(jnp.ones(C_hid), jnp.zeros(C_hid),
                      jnp.zeros(C_hid), jnp.ones(C_hid))
    s2, b2 = _fold_bn(jnp.ones(C_out), jnp.zeros(C_out),
                      jnp.zeros(C_out), jnp.ones(C_out))

    out = mlp_forward(x, w1, s1, b1, w2, s2, b2)
    out = jax.block_until_ready(out)

    ref = _reference(x, w1, s1, b1, w2, s2, b2)
    assert out.shape == (N, C_out, H, W), out.shape
    assert jnp.allclose(out, ref, atol=2e-5, rtol=2e-5), float(
        jnp.max(jnp.abs(out - ref)))

    print("KERNEL_OK")
</pallas_src>

<mosaic_0001>
module attributes {stable_mosaic.version = 11 : i64} {
  func.func @mlp_kernel(%arg0: i32, %arg1: i32, %arg2: memref<1x4x256xf32, #tpu.memory_space<vmem>>, %arg3: memref<8x4xf32, #tpu.memory_space<vmem>>, %arg4: memref<8x1xf32, #tpu.memory_space<vmem>>, %arg5: memref<4x8xf32, #tpu.memory_space<vmem>>, %arg6: memref<4x1xf32, #tpu.memory_space<vmem>>, %arg7: memref<1x4x256xf32, #tpu.memory_space<vmem>>) attributes {dimension_semantics = [#tpu.dimension_semantics<parallel>, #tpu.dimension_semantics<parallel>], iteration_bounds = array<i64: 2, 1>, scalar_prefetch = 0 : i64, scratch_operands = 0 : i64, tpu.core_type = #tpu.core_type<tc>, window_params = [{transform_indices = @transform_0, window_bounds = array<i64: 1, 4, 256>}, {pipeline_mode = #tpu.pipeline_mode<synchronous>, transform_indices = @transform_1, window_bounds = array<i64: 8, 4>}, {pipeline_mode = #tpu.pipeline_mode<synchronous>, transform_indices = @transform_2, window_bounds = array<i64: 8, 1>}, {pipeline_mode = #tpu.pipeline_mode<synchronous>, transform_indices = @transform_3, window_bounds = array<i64: 4, 8>}, {pipeline_mode = #tpu.pipeline_mode<synchronous>, transform_indices = @transform_4, window_bounds = array<i64: 4, 1>}, {transform_indices = @transform_5, window_bounds = array<i64: 1, 4, 256>}]} {
    %c0 = arith.constant 0 : index
    %c0_0 = arith.constant 0 : index
    %c0_1 = arith.constant 0 : index
    %0 = vector.load %arg2[%c0, %c0_0, %c0_1] : memref<1x4x256xf32, #tpu.memory_space<vmem>>, vector<1x4x256xf32>
    %1 = vector.shape_cast %0 : vector<1x4x256xf32> to vector<4x256xf32>
    %c0_2 = arith.constant 0 : index
    %c0_3 = arith.constant 0 : index
    %2 = vector.load %arg3[%c0_2, %c0_3] : memref<8x4xf32, #tpu.memory_space<vmem>>, vector<8x4xf32>
    %cst = arith.constant dense<0.000000e+00> : vector<8x256xf32>
    %3 = tpu.matmul %2, %1, %cst {dimension_numbers = #tpu.dot_dimension_numbers<[1], [0], [0], [1], [0, 0, 1, 1], [], []>} : vector<8x4xf32>, vector<4x256xf32>, vector<8x256xf32> -> vector<8x256xf32>
    %c0_4 = arith.constant 0 : index
    %c0_5 = arith.constant 0 : index
    %4 = vector.load %arg4[%c0_4, %c0_5] : memref<8x1xf32, #tpu.memory_space<vmem>>, vector<8x1xf32>
    %5 = vector.broadcast %4 : vector<8x1xf32> to vector<8x256xf32>
    %6 = arith.addf %3, %5 : vector<8x256xf32>
    %7 = arith.negf %6 : vector<8x256xf32>
    %8 = math.exp %7 : vector<8x256xf32>
    %cst_6 = arith.constant 1.000000e+00 : f32
    %9 = vector.broadcast %cst_6 : f32 to vector<8x256xf32>
    %10 = arith.addf %9, %8 : vector<8x256xf32>
    %11 = arith.divf %9, %10 : vector<8x256xf32>
    %12 = arith.mulf %6, %11 : vector<8x256xf32>
    %cst_7 = arith.constant 5.000000e-01 : f32
    %13 = vector.broadcast %cst_7 : f32 to vector<8x256xf32>
    %14 = arith.mulf %13, %12 : vector<8x256xf32>
    %cst_8 = arith.constant 0.707106769 : f32
    %15 = vector.broadcast %cst_8 : f32 to vector<8x256xf32>
    %16 = arith.mulf %12, %15 : vector<8x256xf32>
    %17 = math.erf %16 : vector<8x256xf32>
    %cst_9 = arith.constant 1.000000e+00 : f32
    %18 = vector.broadcast %cst_9 : f32 to vector<8x256xf32>
    %19 = arith.addf %18, %17 : vector<8x256xf32>
    %20 = arith.mulf %14, %19 : vector<8x256xf32>
    %c0_10 = arith.constant 0 : index
    %c0_11 = arith.constant 0 : index
    %21 = vector.load %arg5[%c0_10, %c0_11] : memref<4x8xf32, #tpu.memory_space<vmem>>, vector<4x8xf32>
    %cst_12 = arith.constant dense<0.000000e+00> : vector<4x256xf32>
    %22 = tpu.matmul %21, %20, %cst_12 {dimension_numbers = #tpu.dot_dimension_numbers<[1], [0], [0], [1], [0, 0, 1, 1], [], []>} : vector<4x8xf32>, vector<8x256xf32>, vector<4x256xf32> -> vector<4x256xf32>
    %c0_13 = arith.constant 0 : index
    %c0_14 = arith.constant 0 : index
    %23 = vector.load %arg6[%c0_13, %c0_14] : memref<4x1xf32, #tpu.memory_space<vmem>>, vector<4x1xf32>
    %24 = vector.broadcast %23 : vector<4x1xf32> to vector<4x256xf32>
    %25 = arith.addf %22, %24 : vector<4x256xf32>
    %26 = arith.negf %25 : vector<4x256xf32>
    %27 = math.exp %26 : vector<4x256xf32>
    %cst_15 = arith.constant 1.000000e+00 : f32
    %28 = vector.broadcast %cst_15 : f32 to vector<4x256xf32>
    %29 = arith.addf %28, %27 : vector<4x256xf32>
    %30 = arith.divf %28, %29 : vector<4x256xf32>
    %31 = arith.mulf %25, %30 : vector<4x256xf32>
    %c0_16 = arith.constant 0 : index
    %c0_17 = arith.constant 0 : index
    %c0_18 = arith.constant 0 : index
    %32 = vector.load %arg7[%c0_16, %c0_17, %c0_18] : memref<1x4x256xf32, #tpu.memory_space<vmem>>, vector<1x4x256xf32>
    %33 = vector.shape_cast %32 : vector<1x4x256xf32> to vector<4x256xf32>
    %34 = vector.shape_cast %31 : vector<4x256xf32> to vector<1x4x256xf32>
    tpu.vector_store %arg7[%c0_16, %c0_17, %c0_18], %34 {strides = array<i32>} : memref<1x4x256xf32, #tpu.memory_space<vmem>>, vector<1x4x256xf32>,
    return
  }
  func.func @transform_0(%arg0: i32, %arg1: i32) -> (i32, i32, i32) {
    %c0_i32 = arith.constant 0 : i32
    %c0_i32_0 = arith.constant 0 : i32
    return %arg0, %c0_i32, %arg1 : i32, i32, i32
  }
  func.func @transform_1(%arg0: i32, %arg1: i32) -> (i32, i32) {
    %c0_i32 = arith.constant 0 : i32
    %c0_i32_0 = arith.constant 0 : i32
    %c0_i32_1 = arith.constant 0 : i32
    return %c0_i32, %c0_i32_0 : i32, i32
  }
  func.func @transform_2(%arg0: i32, %arg1: i32) -> (i32, i32) {
    %c0_i32 = arith.constant 0 : i32
    %c0_i32_0 = arith.constant 0 : i32
    %c0_i32_1 = arith.constant 0 : i32
    return %c0_i32, %c0_i32_0 : i32, i32
  }
  func.func @transform_3(%arg0: i32, %arg1: i32) -> (i32, i32) {
    %c0_i32 = arith.constant 0 : i32
    %c0_i32_0 = arith.constant 0 : i32
    %c0_i32_1 = arith.constant 0 : i32
    return %c0_i32, %c0_i32_0 : i32, i32
  }
  func.func @transform_4(%arg0: i32, %arg1: i32) -> (i32, i32) {
    %c0_i32 = arith.constant 0 : i32
    %c0_i32_0 = arith.constant 0 : i32
    %c0_i32_1 = arith.constant 0 : i32
    return %c0_i32, %c0_i32_0 : i32, i32
  }
  func.func @transform_5(%arg0: i32, %arg1: i32) -> (i32, i32, i32) {
    %c0_i32 = arith.constant 0 : i32
    %c0_i32_0 = arith.constant 0 : i32
    return %arg0, %c0_i32, %arg1 : i32, i32, i32
  }
}

</mosaic_0001>

<bundles_post_ra>
// kernel: mlp_forward.1
= control target key start
LH: loop header
LB: loop body
LE: loop exit
PB: predicated region body
PF: predicated region fallthrough
CT: control target
= control target key end

     0   :  { %s691_s18 = smov 0   ;;  %s693_s19 = smov 0   ;;  %s743_s0 = inlined_call_operand.vmem [shape: f32[2,4,256], index: 0, kind: input, shape index: {}]   ;;  %s744_s1 = inlined_call_operand.vmem [shape: f32[8,4], index: 1, kind: input, shape index: {}]   ;;  %s745_s2 = inlined_call_operand.vmem [shape: f32[8,1], index: 2, kind: input, shape index: {}]   ;;  %s746_s3 = inlined_call_operand.vmem [shape: f32[4,8], index: 3, kind: input, shape index: {}]   ;;  %s747_s4 = inlined_call_operand.vmem [shape: f32[4,1], index: 4, kind: input, shape index: {}]   ;;  %s748_s5 = inlined_call_operand.vmem [shape: f32[2,4,256], index: 5, kind: output, shape index: {}]  }
   0x1   :  { %s695_s20 = smov 0  }
   0x2 LB: > { %s27_s21 = sadd.s32 1, %s653_s19  ;;  %p570_p0 = scmp.ge.s32.totalorder %s657_s20, 1  ;;  %s657_s20 = sphi %s695_s20, %s15_s20   ;;  %s653_s19 = sphi %s693_s19, %s750_s19   ;;  %s649_s18 = sphi %s691_s18, %s749_s18  }
   0x3   : > { %p29_p1 = scmp.ge.s32.totalorder %s27_s21, 2  ;;  %p208_p2 = scmp.lt.s32.totalorder %s657_s20, 3 }
   0x5   : > { %s752_s21 = smov (%p29_p1, %s27_s21), 0  ;;  %p209_p3 = pnand %p570_p0, %p208_p2 }
   0x6   : > { %p245_p4 = scmp.lt.s32.totalorder (!%p209_p3), %s649_s18, 1  ;;  %v659_v0 = vmov (!%p209_p3), 0.0   ;;  %v660_v1 = vmov (!%p209_p3), 0   ;;  %v266_v2 = vld [vmem:[%s745_s2] sm:$0xff] (!%p209_p3)  ;;  %vm278_vm0 = vcmask (!%p209_p3), 1043456   ;;  %vm274_vm1 = vcmask (!%p209_p3), 31744  }
   0x7   : > { %212 = sbr.rel (%p209_p3) target bundleno = 530 (0x212), region = 40  ;;  %347 = vmatprep.mubr.f32.mxu0 (!%p209_p3), %v659_v0  ;;  %613 = vset.pattern.permute.xlu0 (!%p209_p3), %v660_v1  ;;  %v379_v3 = vld [vmem:[%s747_s4] sm:$0xf] (!%p209_p3)  ;;  %vm385_vm2 = vcmask (!%p209_p3), 64512  }
   0x8   : > { %269 = vperm.xlu0 (!%p209_p3), %613, %v266_v2   ;;  %453 = vmatprep.mubr.f32.mxu1 (!%p209_p3), %v659_v0  ;;  %v265_v6 = vld [vmem:[%s744_s1] sm:$0xff] (!%p209_p3) }
   0x9   : > { %v378_v32 = vld [vmem:[%s746_s3] sm:$0xf] (!%p209_p3) }
   0xc   : > { %382 = vperm.xlu0 (!%p209_p3), %613, %v379_v3  }
   0xe   : > { %s754_s18 = smov (!%p245_p4, %s649_s18), 1 }
   0xf   : > { %s585_s26 = sshll.u32 %s754_s18, 3 }
  0x10   : > { %s252_s29 = scalar_lea.vmem %s743_s0, %s585_s26  ;;  %s262_s11 = scalar_lea.vmem %s748_s5, %s585_s26 }
  0x11   : > { %v264_v4 = vld [vmem:[%s252_s29] sm:$0xff] }
  0x12   : > { %v273_v5 = vcombine.high %v264_v4, %v264_v4 }
  0x14   : > { %575 = vmatprep.subr.msk.mxu0 %vm278_vm0, %v273_v5 }
  0x15   : > { %576 = vmatpush1.msk.msra.mxu0 %vm278_vm0, %v264_v4 }
  0x16   : > { %577 = vmatmul.mubr.msk.f32.vlgmr.msra.gmra.mrb[0].mxu0 %vm274_vm1, %v265_v6 }
  0x87   : > { %v270_v7 = vpop.permute.xlu0 %269 }
  0x8b   : > { %v383_v33 = vpop.permute.xlu0 %382 }
  0xe9   : > { %v349_v8 = vpop.f32.mrb[0].mxu0 }
  0xea   : > { %v350_v9 = vadd.f32 %v349_v8, %v270_v7  ;;  %v351_v10 = vpop.f32.mrb[1].mxu0 }
  0xeb   : > { %v352_v11 = vadd.f32 %v351_v10, %v270_v7 }
  0xec   : > { %v578_v12 = vmul.f32 -1.442695, %v350_v9 }
  0xed   : > { %v579_v13 = vmul.f32 -1.442695, %v352_v11 }
  0xee   : > { %615 = vpow2.f32 %v578_v12 }
  0xef   : > { %617 = vpow2.f32 %v579_v13 }
  0xf8   : > { %v616_v14 = vpop.eup %615 }
  0xf9   : > { %v618_v15 = vpop.eup %617  ;;  %v360_v16 = vadd.f32 1.0, %v616_v14 }
  0xfa   : > { %v361_v17 = vadd.f32 1.0, %v618_v15 }
  0xfb   : > { %619 = vrcp.f32 %v360_v16 }
  0xfc   : > { %621 = vrcp.f32 %v361_v17 }
 0x105   : > { %v620_v18 = vpop.eup %619 }
 0x106   : > { %v622_v19 = vpop.eup %621  ;;  %v366_v20 = vmul.f32 %v620_v18, %v350_v9 }
 0x107   : > { %v367_v21 = vmul.f32 %v622_v19, %v352_v11 }
 0x108   : > { %v370_v22 = vmul.f32 0.70710677, %v366_v20  ;;  %v368_v29 = vmul.f32 0.5, %v366_v20 }
 0x109   : > { %v371_v23 = vmul.f32 0.70710677, %v367_v21  ;;  %v369_v27 = vmul.f32 0.5, %v367_v21 }
 0x10a   : > { %623 = verf.f32 %v370_v22 }
 0x10b   : > { %625 = verf.f32 %v371_v23 }
 0x114   : > { %v624_v24 = vpop.eup %623 }
 0x115   : > { %v626_v25 = vpop.eup %625  ;;  %v374_v26 = vadd.f32 1.0, %v624_v24 }
 0x116   : > { %v375_v28 = vadd.f32 1.0, %v626_v25 }
 0x117   : > { %v376_v31 = vmul.f32 %v374_v26, %v368_v29 }
 0x118   : > { %v377_v30 = vmul.f32 %v375_v28, %v369_v27 }
 0x11a   : > { %389 = vmatprep.subr.mxu1 %v377_v30 }
 0x11b   : > { %390 = vmatpush1.msra.mxu1 %v376_v31 }
 0x11c   : > { %580 = vmatmul.mubr.msk.f32.vlgmr.msra.gmra.mrb[0].mxu1 %vm385_vm2, %v378_v32 }
 0x1ef   : > { %v455_v34 = vpop.f32.mrb[0].mxu1 }
 0x1f0   : > { %v456_v35 = vadd.f32 %v455_v34, %v383_v33  ;;  %v457_v36 = vpop.f32.mrb[1].mxu1 }
 0x1f1   : > { %v458_v37 = vadd.f32 %v457_v36, %v383_v33 }
 0x1f2   : > { %v581_v38 = vmul.f32 -1.442695, %v456_v35 }
 0x1f3   : > { %v582_v39 = vmul.f32 -1.442695, %v458_v37 }
 0x1f4   : > { %627 = vpow2.f32 %v581_v38 }
 0x1f5   : > { %629 = vpow2.f32 %v582_v39 }
 0x1fe   : > { %v628_v40 = vpop.eup %627 }
 0x1ff   : > { %v630_v41 = vpop.eup %629  ;;  %v466_v42 = vadd.f32 1.0, %v628_v40 }
 0x200   : > { %v467_v43 = vadd.f32 1.0, %v630_v41 }
 0x201   : > { %631 = vrcp.f32 %v466_v42 }
 0x202   : > { %633 = vrcp.f32 %v467_v43 }
 0x20b   : > { %v632_v44 = vpop.eup %631 }
 0x20c   : > { %v634_v45 = vpop.eup %633  ;;  %v472_v46 = vmul.f32 %v632_v44, %v456_v35 }
 0x20d   : > { %v473_v47 = vmul.f32 %v634_v45, %v458_v37 }
 0x20f   : > { %v476_v48 = vcombine.low %v472_v46, %v473_v47 }
 0x211   : > { %478 = vst [vmem:[%s262_s11] sm:$0xff] %v476_v48 }
 0x212 PF: > { %s15_s20 = sadd.s32 1, %s657_s20   ;;  %s749_s18 = smov %s653_s19 }
 0x213   : > { %p12_p5 = scmp.ge.s32.totalorder %s15_s20, 4   ;;  %s750_s19 = smov %s752_s21 }
 0x215   :  { %14 = sbr.rel (!%p12_p5) target bundleno = 2 (0x2), region = 70 }

</bundles_post_ra>
